<compile_context>
chip_gen: v6e
topology: v6e:2x2x1
jax: 0.10.0
libtpu: 0.0.40
codegen_flags: <defaults>
</compile_context>

<pallas_src>
import functools

import jax
import jax.numpy as jnp
from jax import lax
from jax.experimental import pallas as pl
from jax.experimental.pallas import tpu as pltpu


def _fused_conv_bn_relu_kernel(patch_ref, w_ref, gamma_ref, beta_ref, o_ref, y_scr,
                               *, rows_per_chunk, count, eps):
    """One Cout tile: im2col matmul (chunked) -> batch stats -> BN affine + ReLU.

    patch_ref : (NMp, KKC)  bf16  im2col patches, rows = N*Ho*Wo (zero-padded to NMp)
    w_ref     : (KKC, CT)   bf16  symmetrized weight slab, taps flattened
    gamma_ref : (1, CT)     f32   BN gamma (padded lanes = 1)
    beta_ref  : (1, CT)     f32   BN beta  (padded lanes = 0)
    o_ref     : (NMp, CT)   f32   BN+ReLU output slab
    y_scr     : (NMp, CT)   f32   VMEM scratch holding the conv result for this tile
    """
    nmp = o_ref.shape[0]
    ct = o_ref.shape[1]
    n_chunks = nmp // rows_per_chunk
    w = w_ref[...]

    # Pass 1: chunked MXU matmul into the VMEM scratch; accumulate per-channel sum / sum-sq.
    # Zero-padded rows contribute 0 to both sums; dividing by the true `count` keeps the
    # statistics exact. Static Python loop: trip count is tiny at these shapes.
    # TODO(synk): switch to lax.fori_loop(..., unroll=True) if NMp grows large.
    s = jnp.zeros((1, ct), jnp.float32)
    sq = jnp.zeros((1, ct), jnp.float32)
    for c in range(n_chunks):
        r0 = c * rows_per_chunk
        acc = jnp.dot(patch_ref[pl.ds(r0, rows_per_chunk), :], w,
                      preferred_element_type=jnp.float32)           # (rows, CT) f32
        y_scr[pl.ds(r0, rows_per_chunk), :] = acc
        s = s + jnp.sum(acc, axis=0, keepdims=True)
        sq = sq + jnp.sum(acc * acc, axis=0, keepdims=True)

    # Finalize biased batch statistics (training-mode BatchNorm2d) and the affine fold.
    # TODO(synk): E[y^2]-mean^2 in f32; use a centered second pass over the resident scratch
    #             if activations ever have a mean large relative to their spread.
    inv_count = 1.0 / count
    mean = s * inv_count
    var = jnp.maximum(sq * inv_count - mean * mean, 0.0)
    scale = gamma_ref[...] * lax.rsqrt(var + eps)                    # (1, CT)
    shift = beta_ref[...] - mean * scale

    # Pass 2: BN affine + ReLU from the resident VMEM scratch, lane-dense store.
    for c in range(n_chunks):
        r0 = c * rows_per_chunk
        y = y_scr[pl.ds(r0, rows_per_chunk), :]
        o_ref[pl.ds(r0, rows_per_chunk), :] = jnp.maximum(y * scale + shift, 0.0)


def _pick_cout_tile(cout):
    """Cout tile width: 256 columns on v6e/v7x MXUs, 128 on v5e or when Cout is tiny."""
    if cout <= 128:
        return 128          # don't pad a tiny Cout out to 256 zero columns
    try:
        kind = jax.devices()[0].device_kind.lower()
        if ("v6" in kind) or ("v7" in kind):
            return 256
    except Exception:
        pass
    return 128


def groupy_conv2_forward(x_nchw, weight, gamma, beta, *, stride, output_shape, eps=1e-5):
    """Forward pass of GroupyConv2 (PreCM2 conv -> BatchNorm2d (train) -> ReLU).

    x_nchw : (N, Cin, H, W) float32
    weight : (K, K, Cin, Cout) float32 (HWIO, base PreCM kernel)
    gamma, beta : (Cout,) BatchNorm affine parameters
    Returns (N, Cout, Ho, Wo) float32.
    """
    N, Cin, H, W = x_nchw.shape
    K = weight.shape[0]
    Cout = weight.shape[-1]
    Ho, Wo = output_shape

    CT = _pick_cout_tile(Cout)
    Cp = ((Cout + CT - 1) // CT) * CT
    KKC = K * K * Cin

    # PreCM kernel symmetrization (sum of the 4 planar rotations) in f32; pad Cout -> Cp with
    # zero columns (keeps padded output lanes exactly zero), flatten taps (kh, kw, cin) to match
    # the wrapper im2col ordering, cast to bf16 for the MXU.
    w_sym = (weight
             + jnp.rot90(weight, 1, axes=(0, 1))
             + jnp.rot90(weight, 2, axes=(0, 1))
             + jnp.rot90(weight, 3, axes=(0, 1))).astype(jnp.float32)
    w_p = jnp.pad(w_sym, ((0, 0), (0, 0), (0, 0), (0, Cp - Cout)))
    w2 = w_p.reshape(KKC, Cp).astype(jnp.bfloat16)

    # Padding chosen so the conv output spatial size equals output_shape.
    # TODO(synk): verify against the real PreCM2 padding rule when the valid output is larger.
    pad_h = max((Ho - 1) * stride + K - H, 0)
    pad_w = max((Wo - 1) * stride + K - W, 0)
    pt, pb = pad_h // 2, pad_h - pad_h // 2
    pleft, pright = pad_w // 2, pad_w - pad_w // 2

    # bf16 first, then layout transpose + spatial pad (halves that wrapper HBM traffic).
    x = jnp.transpose(x_nchw.astype(jnp.bfloat16), (0, 2, 3, 1))              # NCHW -> NHWC
    x_pad = jnp.pad(x, ((0, 0), (pt, pb), (pleft, pright), (0, 0)))

    # Wrapper-side im2col (ordering (kh, kw, cin) matches the weight reshape above).
    pieces = []
    for kh in range(K):
        for kw in range(K):
            pieces.append(x_pad[:, kh: kh + (Ho - 1) * stride + 1: stride,
                                kw: kw + (Wo - 1) * stride + 1: stride, :])
    patch = jnp.concatenate(pieces, axis=-1)                                  # (N, Ho, Wo, KKC)

    NM = N * Ho * Wo
    # Row chunk sized so one f32 acc chunk is <= 32 vregs (rows*CT*4B <= 128 KiB).
    rows_max = 32768 // CT
    rows_per_chunk = min(rows_max, ((NM + 7) // 8) * 8)
    NMp = ((NM + rows_per_chunk - 1) // rows_per_chunk) * rows_per_chunk

    patch2 = patch.reshape(NM, KKC)
    if NMp != NM:
        patch2 = jnp.pad(patch2, ((0, NMp - NM), (0, 0)))                     # zero rows

    gamma2 = jnp.pad(gamma.astype(jnp.float32), (0, Cp - Cout),
                     constant_values=1.0).reshape(1, Cp)
    beta2 = jnp.pad(beta.astype(jnp.float32), (0, Cp - Cout)).reshape(1, Cp)

    fused = pl.pallas_call(
        functools.partial(_fused_conv_bn_relu_kernel,
                          rows_per_chunk=rows_per_chunk, count=float(NM), eps=eps),
        out_shape=jax.ShapeDtypeStruct((NMp, Cp), jnp.float32),
        grid_spec=pltpu.PrefetchScalarGridSpec(
            num_scalar_prefetch=0,
            grid=(Cp // CT,),
            in_specs=[
                # Constant block index across the Cout-tile axis -> DMA'd once, reused.
                pl.BlockSpec((NMp, KKC), lambda j: (0, 0)),
                pl.BlockSpec((KKC, CT), lambda j: (0, j)),
                pl.BlockSpec((1, CT), lambda j: (0, j)),
                pl.BlockSpec((1, CT), lambda j: (0, j)),
            ],
            out_specs=pl.BlockSpec((NMp, CT), lambda j: (0, j)),
            scratch_shapes=[pltpu.VMEM((NMp, CT), jnp.float32)],
        ),
        compiler_params=pltpu.CompilerParams(
            dimension_semantics=("parallel",),
            # Explicit budget: above the 16 MiB (v5e) / 32 MiB (v6e/v7x) scoped defaults but
            # under v7x's 64 MiB physical VMEM. Actual use at these shapes is ~1 MiB.
            vmem_limit_bytes=48 * 1024 * 1024,
        ),
    )
    out2 = fused(patch2, w2, gamma2, beta2)                                    # (NMp, Cp) f32

    out_nhwc = out2[:NM].reshape(N, Ho, Wo, Cp)[..., :Cout]                   # strip padding
    return jnp.transpose(out_nhwc, (0, 3, 1, 2))                              # NHWC -> NCHW


def reference_forward(x_nchw, weight, gamma, beta, *, stride, output_shape, eps=1e-5):
    """Pure-JAX reference with matching semantics / precision (bf16 MXU inputs, f32 accum)."""
    N, Cin, H, W = x_nchw.shape
    K = weight.shape[0]
    Ho, Wo = output_shape
    w_sym = (weight
             + jnp.rot90(weight, 1, axes=(0, 1))
             + jnp.rot90(weight, 2, axes=(0, 1))
             + jnp.rot90(weight, 3, axes=(0, 1))).astype(jnp.float32)
    pad_h = max((Ho - 1) * stride + K - H, 0)
    pad_w = max((Wo - 1) * stride + K - W, 0)
    pt, pb = pad_h // 2, pad_h - pad_h // 2
    pleft, pright = pad_w // 2, pad_w - pad_w // 2
    x = jnp.transpose(x_nchw, (0, 2, 3, 1)).astype(jnp.float32)
    y = lax.conv_general_dilated(
        x.astype(jnp.bfloat16), w_sym.astype(jnp.bfloat16),
        window_strides=(stride, stride),
        padding=[(pt, pb), (pleft, pright)],
        dimension_numbers=("NHWC", "HWIO", "NHWC"),
        preferred_element_type=jnp.float32)
    mean = jnp.mean(y, axis=(0, 1, 2))
    var = jnp.var(y, axis=(0, 1, 2))                                     # biased, like PyTorch BN
    yn = (y - mean) / jnp.sqrt(var + eps) * gamma + beta
    out = jnp.maximum(yn, 0.0)
    return jnp.transpose(out, (0, 3, 1, 2))


if __name__ == "__main__":
    key = jax.random.PRNGKey(0)
    kx, kw, kg, kb = jax.random.split(key, 4)

    N, Cin, H, W = 2, 4, 16, 16
    Cout, K, stride = 8, 3, 1
    output_shape = (16, 16)

    x = jax.random.normal(kx, (N, Cin, H, W), jnp.float32)
    weight = jax.random.normal(kw, (K, K, Cin, Cout), jnp.float32) * 0.1
    gamma = 1.0 + 0.1 * jax.random.normal(kg, (Cout,), jnp.float32)
    beta = 0.1 * jax.random.normal(kb, (Cout,), jnp.float32)

    fwd = jax.jit(functools.partial(groupy_conv2_forward,
                                    stride=stride, output_shape=output_shape))
    out = jax.block_until_ready(fwd(x, weight, gamma, beta))

    ref = jax.block_until_ready(
        reference_forward(x, weight, gamma, beta, stride=stride, output_shape=output_shape))

    assert out.shape == (N, Cout, output_shape[0], output_shape[1]), out.shape
    err = float(jnp.max(jnp.abs(out - ref)))
    assert err < 2e-3, err
    print("KERNEL_OK")
</pallas_src>

<mosaic_0001>
module attributes {stable_mosaic.version = 11 : i64} {
  func.func @_fused_conv_bn_relu_kernel(%arg0: i32, %arg1: memref<512x36xbf16, #tpu.memory_space<vmem>>, %arg2: memref<36x128xbf16, #tpu.memory_space<vmem>>, %arg3: memref<1x128xf32, #tpu.memory_space<vmem>>, %arg4: memref<1x128xf32, #tpu.memory_space<vmem>>, %arg5: memref<512x128xf32, #tpu.memory_space<vmem>>, %arg6: memref<512x128xf32, #tpu.memory_space<vmem>>) attributes {dimension_semantics = [#tpu.dimension_semantics<parallel>], iteration_bounds = array<i64: 1>, scalar_prefetch = 0 : i64, scratch_operands = 1 : i64, tpu.core_type = #tpu.core_type<tc>, window_params = [{pipeline_mode = #tpu.pipeline_mode<synchronous>, transform_indices = @transform_0, window_bounds = array<i64: 512, 36>}, {transform_indices = @transform_1, window_bounds = array<i64: 36, 128>}, {transform_indices = @transform_2, window_bounds = array<i64: 1, 128>}, {transform_indices = @transform_3, window_bounds = array<i64: 1, 128>}, {transform_indices = @transform_4, window_bounds = array<i64: 512, 128>}]} {
    %c0 = arith.constant 0 : index
    %c0_0 = arith.constant 0 : index
    %0 = vector.load %arg2[%c0, %c0_0] : memref<36x128xbf16, #tpu.memory_space<vmem>>, vector<36x128xbf16>
    %cst = arith.constant 0.000000e+00 : f32
    %1 = vector.broadcast %cst : f32 to vector<1x128xf32>
    %cst_1 = arith.constant 0.000000e+00 : f32
    %2 = vector.broadcast %cst_1 : f32 to vector<1x128xf32>
    %c0_2 = arith.constant 0 : index
    %c0_3 = arith.constant 0 : index
    %3 = vector.load %arg1[%c0_2, %c0_3] : memref<512x36xbf16, #tpu.memory_space<vmem>>, vector<256x36xbf16>
    %cst_4 = arith.constant dense<0.000000e+00> : vector<256x128xf32>
    %4 = tpu.matmul %3, %0, %cst_4 {dimension_numbers = #tpu.dot_dimension_numbers<[1], [0], [0], [1], [0, 0, 1, 1], [], []>} : vector<256x36xbf16>, vector<36x128xbf16>, vector<256x128xf32> -> vector<256x128xf32>
    %c0_5 = arith.constant 0 : index
    %c0_6 = arith.constant 0 : index
    %5 = vector.load %arg6[%c0_5, %c0_6] : memref<512x128xf32, #tpu.memory_space<vmem>>, vector<256x128xf32>
    tpu.vector_store %arg6[%c0_5, %c0_6], %4 {strides = array<i32>} : memref<512x128xf32, #tpu.memory_space<vmem>>, vector<256x128xf32>,
    %cst_7 = arith.constant dense<0.000000e+00> : vector<128xf32>
    %6 = vector.multi_reduction <add>, %4, %cst_7 [0] : vector<256x128xf32> to vector<128xf32>
    %7 = vector.shape_cast %6 : vector<128xf32> to vector<1x128xf32>
    %8 = arith.addf %1, %7 : vector<1x128xf32>
    %9 = arith.mulf %4, %4 : vector<256x128xf32>
    %cst_8 = arith.constant dense<0.000000e+00> : vector<128xf32>
    %10 = vector.multi_reduction <add>, %9, %cst_8 [0] : vector<256x128xf32> to vector<128xf32>
    %11 = vector.shape_cast %10 : vector<128xf32> to vector<1x128xf32>
    %12 = arith.addf %2, %11 : vector<1x128xf32>
    %c256 = arith.constant 256 : index
    %c0_9 = arith.constant 0 : index
    %13 = vector.load %arg1[%c256, %c0_9] : memref<512x36xbf16, #tpu.memory_space<vmem>>, vector<256x36xbf16>
    %cst_10 = arith.constant dense<0.000000e+00> : vector<256x128xf32>
    %14 = tpu.matmul %13, %0, %cst_10 {dimension_numbers = #tpu.dot_dimension_numbers<[1], [0], [0], [1], [0, 0, 1, 1], [], []>} : vector<256x36xbf16>, vector<36x128xbf16>, vector<256x128xf32> -> vector<256x128xf32>
    %c256_11 = arith.constant 256 : index
    %c0_12 = arith.constant 0 : index
    %15 = vector.load %arg6[%c256_11, %c0_12] : memref<512x128xf32, #tpu.memory_space<vmem>>, vector<256x128xf32>
    tpu.vector_store %arg6[%c256_11, %c0_12], %14 {strides = array<i32>} : memref<512x128xf32, #tpu.memory_space<vmem>>, vector<256x128xf32>,
    %cst_13 = arith.constant dense<0.000000e+00> : vector<128xf32>
    %16 = vector.multi_reduction <add>, %14, %cst_13 [0] : vector<256x128xf32> to vector<128xf32>
    %17 = vector.shape_cast %16 : vector<128xf32> to vector<1x128xf32>
    %18 = arith.addf %8, %17 : vector<1x128xf32>
    %19 = arith.mulf %14, %14 : vector<256x128xf32>
    %cst_14 = arith.constant dense<0.000000e+00> : vector<128xf32>
    %20 = vector.multi_reduction <add>, %19, %cst_14 [0] : vector<256x128xf32> to vector<128xf32>
    %21 = vector.shape_cast %20 : vector<128xf32> to vector<1x128xf32>
    %22 = arith.addf %12, %21 : vector<1x128xf32>
    %cst_15 = arith.constant 0.001953125 : f32
    %23 = vector.broadcast %cst_15 : f32 to vector<1x128xf32>
    %24 = arith.mulf %18, %23 : vector<1x128xf32>
    %cst_16 = arith.constant 0.001953125 : f32
    %25 = vector.broadcast %cst_16 : f32 to vector<1x128xf32>
    %26 = arith.mulf %22, %25 : vector<1x128xf32>
    %27 = arith.mulf %24, %24 : vector<1x128xf32>
    %28 = arith.subf %26, %27 : vector<1x128xf32>
    %cst_17 = arith.constant 0.000000e+00 : f32
    %29 = vector.broadcast %cst_17 : f32 to vector<1x128xf32>
    %30 = arith.maximumf %28, %29 : vector<1x128xf32>
    %c0_18 = arith.constant 0 : index
    %c0_19 = arith.constant 0 : index
    %31 = vector.load %arg3[%c0_18, %c0_19] : memref<1x128xf32, #tpu.memory_space<vmem>>, vector<1x128xf32>
    %cst_20 = arith.constant 9.99999974E-6 : f32
    %32 = vector.broadcast %cst_20 : f32 to vector<1x128xf32>
    %33 = arith.addf %30, %32 : vector<1x128xf32>
    %34 = math.rsqrt %33 : vector<1x128xf32>
    %35 = arith.mulf %31, %34 : vector<1x128xf32>
    %c0_21 = arith.constant 0 : index
    %c0_22 = arith.constant 0 : index
    %36 = vector.load %arg4[%c0_21, %c0_22] : memref<1x128xf32, #tpu.memory_space<vmem>>, vector<1x128xf32>
    %37 = arith.mulf %24, %35 : vector<1x128xf32>
    %38 = arith.subf %36, %37 : vector<1x128xf32>
    %c0_23 = arith.constant 0 : index
    %c0_24 = arith.constant 0 : index
    %39 = vector.load %arg6[%c0_23, %c0_24] : memref<512x128xf32, #tpu.memory_space<vmem>>, vector<256x128xf32>
    %40 = vector.broadcast %35 : vector<1x128xf32> to vector<256x128xf32>
    %41 = arith.mulf %39, %40 : vector<256x128xf32>
    %42 = vector.broadcast %38 : vector<1x128xf32> to vector<256x128xf32>
    %43 = arith.addf %41, %42 : vector<256x128xf32>
    %cst_25 = arith.constant 0.000000e+00 : f32
    %44 = vector.broadcast %cst_25 : f32 to vector<256x128xf32>
    %45 = arith.maximumf %43, %44 : vector<256x128xf32>
    %c0_26 = arith.constant 0 : index
    %c0_27 = arith.constant 0 : index
    %46 = vector.load %arg5[%c0_26, %c0_27] : memref<512x128xf32, #tpu.memory_space<vmem>>, vector<256x128xf32>
    tpu.vector_store %arg5[%c0_26, %c0_27], %45 {strides = array<i32>} : memref<512x128xf32, #tpu.memory_space<vmem>>, vector<256x128xf32>,
    %c256_28 = arith.constant 256 : index
    %c0_29 = arith.constant 0 : index
    %47 = vector.load %arg6[%c256_28, %c0_29] : memref<512x128xf32, #tpu.memory_space<vmem>>, vector<256x128xf32>
    %48 = vector.broadcast %35 : vector<1x128xf32> to vector<256x128xf32>
    %49 = arith.mulf %47, %48 : vector<256x128xf32>
    %50 = vector.broadcast %38 : vector<1x128xf32> to vector<256x128xf32>
    %51 = arith.addf %49, %50 : vector<256x128xf32>
    %cst_30 = arith.constant 0.000000e+00 : f32
    %52 = vector.broadcast %cst_30 : f32 to vector<256x128xf32>
    %53 = arith.maximumf %51, %52 : vector<256x128xf32>
    %c256_31 = arith.constant 256 : index
    %c0_32 = arith.constant 0 : index
    %54 = vector.load %arg5[%c256_31, %c0_32] : memref<512x128xf32, #tpu.memory_space<vmem>>, vector<256x128xf32>
    tpu.vector_store %arg5[%c256_31, %c0_32], %53 {strides = array<i32>} : memref<512x128xf32, #tpu.memory_space<vmem>>, vector<256x128xf32>,
    return
  }
  func.func @transform_0(%arg0: i32) -> (i32, i32) {
    %c0_i32 = arith.constant 0 : i32
    %c0_i32_0 = arith.constant 0 : i32
    %c0_i32_1 = arith.constant 0 : i32
    return %c0_i32, %c0_i32_0 : i32, i32
  }
  func.func @transform_1(%arg0: i32) -> (i32, i32) {
    %c0_i32 = arith.constant 0 : i32
    %c0_i32_0 = arith.constant 0 : i32
    return %c0_i32, %arg0 : i32, i32
  }
  func.func @transform_2(%arg0: i32) -> (i32, i32) {
    %c0_i32 = arith.constant 0 : i32
    %c0_i32_0 = arith.constant 0 : i32
    return %c0_i32, %arg0 : i32, i32
  }
  func.func @transform_3(%arg0: i32) -> (i32, i32) {
    %c0_i32 = arith.constant 0 : i32
    %c0_i32_0 = arith.constant 0 : i32
    return %c0_i32, %arg0 : i32, i32
  }
  func.func @transform_4(%arg0: i32) -> (i32, i32) {
    %c0_i32 = arith.constant 0 : i32
    %c0_i32_0 = arith.constant 0 : i32
    return %c0_i32, %arg0 : i32, i32
  }
}

</mosaic_0001>

<bundles_post_ra>
// kernel: groupy_conv2_forward.1
= control target key start
LH: loop header
LB: loop body
LE: loop exit
PB: predicated region body
PF: predicated region fallthrough
CT: control target
= control target key end

     0   :  { %vm199_vm0 = vcmask 1041408   ;;  %vm150_vm1 = vcmask 293888   ;;  %s2493_s1 = inlined_call_operand.vmem [shape: bf16[36,128], index: 1, kind: input, shape index: {}]   ;;  %s2494_s0 = inlined_call_operand.vmem [shape: bf16[512,36], index: 0, kind: input, shape index: {}]   ;;  %s2495_s2 = inlined_call_operand.vmem [shape: f32[1,128], index: 2, kind: input, shape index: {}]   ;;  %s2496_s3 = inlined_call_operand.vmem [shape: f32[1,128], index: 3, kind: input, shape index: {}]   ;;  %s2497_s4 = inlined_call_operand.vmem [shape: f32[512,128], index: 4, kind: output, shape index: {}]  }
   0x1   :  { %v1496_v0 = vld [vmem:[%s2493_s1 + $0x10] ss:$0 sps:$4 sm:$0x33]   ;;  %v1497_v1 = vld [vmem:[%s2493_s1 + $0x8] sm:$0xff]   ;;  %v1498_v3 = vld [vmem:[%s2493_s1] sm:$0xff]  }
   0x2   :  { %1494 = vmatprep.subr.msk.bf16.mxu0 %vm199_vm0, %v1496_v0  ;;  %1495 = vmatprep.subr.msk.bf16.mxu1 %vm199_vm0, %v1496_v0  ;;  %v201_v2 = vsel %vm199_vm0, %v1496_v0, 0  ;;  %v1499_v4 = vld [vmem:[%s2494_s0] sm:$0xff]   ;;  %v1501_v6 = vld [vmem:[%s2494_s0 + $0x8] sm:$0xff]   ;;  %v1503_v8 = vld [vmem:[%s2494_s0 + $0x10] sm:$0xff]  }
   0x3   :  { %1419 = vmatpush3.bf16.msra.mxu0 %v201_v2  ;;  %1457 = vmatpush3.bf16.msra.mxu1 %v201_v2  ;;  %v1500_v5 = vld [vmem:[%s2494_s0 + $0x80] sm:$0xff]   ;;  %v1502_v7 = vld [vmem:[%s2494_s0 + $0x88] sm:$0xff]   ;;  %v1504_v9 = vld [vmem:[%s2494_s0 + $0x90] sm:$0xff]  }
   0x4   :  { %1420 = vmatprep.subr.bf16.mxu0 %v1497_v1  ;;  %1458 = vmatprep.subr.bf16.mxu1 %v1497_v1  ;;  %v1505_v10 = vld [vmem:[%s2494_s0 + $0x18] sm:$0xff]   ;;  %v1507_v12 = vld [vmem:[%s2494_s0 + $0x20] sm:$0xff]   ;;  %v1509_v14 = vld [vmem:[%s2494_s0 + $0x28] sm:$0xff]  }
   0x5   :  { %1424 = vmatprep.mubr.msk.bf16.mxu0 %vm150_vm1, %v1499_v4  ;;  %1462 = vmatprep.mubr.msk.bf16.mxu1 %vm150_vm1, %v1500_v5  ;;  %v1506_v11 = vld [vmem:[%s2494_s0 + $0x98] sm:$0xff]   ;;  %v1508_v13 = vld [vmem:[%s2494_s0 + $0xa0] sm:$0xff]   ;;  %v1510_v15 = vld [vmem:[%s2494_s0 + $0xa8] sm:$0xff]  }
   0x6   :  { %v1511_v16 = vld [vmem:[%s2494_s0 + $0x30] sm:$0xff]   ;;  %v1513_v18 = vld [vmem:[%s2494_s0 + $0x38] sm:$0xff]   ;;  %v1515_v20 = vld [vmem:[%s2494_s0 + $0x40] sm:$0xff]  }
   0x7   :  { %1421 = vmatpush3.bf16.msra.mxu0 %v1497_v1  ;;  %1459 = vmatpush3.bf16.msra.mxu1 %v1497_v1  ;;  %v1512_v17 = vld [vmem:[%s2494_s0 + $0xb0] sm:$0xff]   ;;  %v1514_v19 = vld [vmem:[%s2494_s0 + $0xb8] sm:$0xff]   ;;  %v1516_v21 = vld [vmem:[%s2494_s0 + $0xc0] sm:$0xff]  }
   0x8   :  { %1422 = vmatprep.subr.bf16.mxu0 %v1498_v3  ;;  %1460 = vmatprep.subr.bf16.mxu1 %v1498_v3  ;;  %v1517_v22 = vld [vmem:[%s2494_s0 + $0x48] sm:$0xff]   ;;  %v1519_v24 = vld [vmem:[%s2494_s0 + $0x50] sm:$0xff]   ;;  %v1521_v26 = vld [vmem:[%s2494_s0 + $0x58] sm:$0xff]  }
   0x9   :  { %v1518_v23 = vld [vmem:[%s2494_s0 + $0xc8] sm:$0xff]   ;;  %v1520_v25 = vld [vmem:[%s2494_s0 + $0xd0] sm:$0xff]   ;;  %v1522_v27 = vld [vmem:[%s2494_s0 + $0xd8] sm:$0xff]  }
   0xa   :  { %v1523_v28 = vld [vmem:[%s2494_s0 + $0x60] sm:$0xff]   ;;  %v1525_v30 = vld [vmem:[%s2494_s0 + $0x68] sm:$0xff]   ;;  %v1527_v32 = vld [vmem:[%s2494_s0 + $0x70] sm:$0xff]  }
   0xb   :  { %1423 = vmatpush3.bf16.msra.mxu0 %v1498_v3  ;;  %1461 = vmatpush3.bf16.msra.mxu1 %v1498_v3  ;;  %v1524_v29 = vld [vmem:[%s2494_s0 + $0xe0] sm:$0xff]   ;;  %v1526_v31 = vld [vmem:[%s2494_s0 + $0xe8] sm:$0xff]   ;;  %v1528_v33 = vld [vmem:[%s2494_s0 + $0xf0] sm:$0xff]  }
   0xc   :  { %v1529_v34 = vld [vmem:[%s2494_s0 + $0x78] sm:$0xff]  }
   0xd   :  { %v1530_v35 = vld [vmem:[%s2494_s0 + $0xf8] sm:$0xff]  }
   0xe   :  { %1425 = vmatmul.mubr.msk.bf16.vlgmr.msra.gmra.mxu0 %vm150_vm1, %v1501_v6  ;;  %1463 = vmatmul.mubr.msk.bf16.vlgmr.msra.gmra.mxu1 %vm150_vm1, %v1502_v7 }
   0xf   :  { %1428 = vmatprep.mubr.msk.bf16.mxu0 %vm150_vm1, %v1503_v8  ;;  %1466 = vmatprep.mubr.msk.bf16.mxu1 %vm150_vm1, %v1504_v9 }
  0x16   :  { %1429 = vmatmul.mubr.msk.bf16.gmra.mxu0 %vm150_vm1, %v1505_v10  ;;  %1467 = vmatmul.mubr.msk.bf16.gmra.mxu1 %vm150_vm1, %v1506_v11 }
  0x17   :  { %1432 = vmatprep.mubr.msk.bf16.mxu0 %vm150_vm1, %v1507_v12  ;;  %1470 = vmatprep.mubr.msk.bf16.mxu1 %vm150_vm1, %v1508_v13 }
  0x1e   :  { %1433 = vmatmul.mubr.msk.bf16.gmra.mxu0 %vm150_vm1, %v1509_v14  ;;  %1471 = vmatmul.mubr.msk.bf16.gmra.mxu1 %vm150_vm1, %v1510_v15 }
  0x1f   :  { %1436 = vmatprep.mubr.msk.bf16.mxu0 %vm150_vm1, %v1511_v16  ;;  %1474 = vmatprep.mubr.msk.bf16.mxu1 %vm150_vm1, %v1512_v17 }
  0x26   :  { %1437 = vmatmul.mubr.msk.bf16.gmra.mxu0 %vm150_vm1, %v1513_v18  ;;  %1475 = vmatmul.mubr.msk.bf16.gmra.mxu1 %vm150_vm1, %v1514_v19 }
  0x27   :  { %1440 = vmatprep.mubr.msk.bf16.mxu0 %vm150_vm1, %v1515_v20  ;;  %1478 = vmatprep.mubr.msk.bf16.mxu1 %vm150_vm1, %v1516_v21 }
  0x2e   :  { %1441 = vmatmul.mubr.msk.bf16.gmra.mxu0 %vm150_vm1, %v1517_v22  ;;  %1479 = vmatmul.mubr.msk.bf16.gmra.mxu1 %vm150_vm1, %v1518_v23 }
  0x2f   :  { %1444 = vmatprep.mubr.msk.bf16.mxu0 %vm150_vm1, %v1519_v24  ;;  %1482 = vmatprep.mubr.msk.bf16.mxu1 %vm150_vm1, %v1520_v25 }
  0x36   :  { %1445 = vmatmul.mubr.msk.bf16.gmra.mxu0 %vm150_vm1, %v1521_v26  ;;  %1483 = vmatmul.mubr.msk.bf16.gmra.mxu1 %vm150_vm1, %v1522_v27 }
  0x37   :  { %1448 = vmatprep.mubr.msk.bf16.mxu0 %vm150_vm1, %v1523_v28  ;;  %1486 = vmatprep.mubr.msk.bf16.mxu1 %vm150_vm1, %v1524_v29 }
  0x3e   :  { %1449 = vmatmul.mubr.msk.bf16.gmra.mxu0 %vm150_vm1, %v1525_v30  ;;  %1487 = vmatmul.mubr.msk.bf16.gmra.mxu1 %vm150_vm1, %v1526_v31 }
  0x3f   :  { %1452 = vmatprep.mubr.msk.bf16.mxu0 %vm150_vm1, %v1527_v32  ;;  %1490 = vmatprep.mubr.msk.bf16.mxu1 %vm150_vm1, %v1528_v33 }
  0x46   :  { %1453 = vmatmul.mubr.msk.bf16.gmra.mxu0 %vm150_vm1, %v1529_v34  ;;  %1491 = vmatmul.mubr.msk.bf16.gmra.mxu1 %vm150_vm1, %v1530_v35 }
  0xce   :  { %v1695_v36 = vpop.f32.mrf.mxu0  ;;  %v1697_v37 = vpop.f32.mrf.mxu1 }
  0xcf   :  { %v436_v50 = vmul.f32 %v1695_v36, %v1695_v36  ;;  %v897_v51 = vmul.f32 %v1697_v37, %v1697_v37 }
  0xd0   :  { %v1699_v38 = vpop.f32.mrf.mxu0  ;;  %v1701_v39 = vpop.f32.mrf.mxu1 }
  0xd1   :  { %v434_v42 = vmul.f32 %v1699_v38, %v1699_v38  ;;  %v895_v43 = vmul.f32 %v1701_v39, %v1701_v39 }
  0xd2   :  { %v1703_v40 = vpop.f32.mrf.mxu0  ;;  %v1705_v41 = vpop.f32.mrf.mxu1 }
  0xd3   :  { %v437_v58 = vmul.f32 %v1703_v40, %v1703_v40  ;;  %v898_v61 = vmul.f32 %v1705_v41, %v1705_v41 }
  0xd4   :  { %v1711_v44 = vpop.f32.mrf.mxu0  ;;  %v1713_v45 = vpop.f32.mrf.mxu1 }
  0xd5   :  { %v396_v46 = vadd.f32 %v1711_v44, %v1699_v38  ;;  %v435_v47 = vmul.f32 %v1711_v44, %v1711_v44  ;;  %v857_v48 = vadd.f32 %v1713_v45, %v1701_v39  ;;  %v896_v49 = vmul.f32 %v1713_v45, %v1713_v45 }
  0xd6   :  { %v1727_v52 = vpop.f32.mrf.mxu0  ;;  %v1729_v53 = vpop.f32.mrf.mxu1 }
  0xd7   :  { %2525 = vst [vmem:[#allocation3_spill] sm:$0xff] %v1729_v53  ;;  %v397_v54 = vadd.f32 %v1695_v36, %v396_v46  ;;  %v466_v55 = vadd.f32 %v435_v47, %v434_v42  ;;  %v858_v56 = vadd.f32 %v1697_v37, %v857_v48  ;;  %v927_v57 = vadd.f32 %v896_v49, %v895_v43 }
  0xd8   :  { %v1735_v59 = vpop.f32.mrf.mxu0  ;;  %v1737_v60 = vpop.f32.mrf.mxu1  ;;  %v440_v20 = vmul.f32 %v1727_v52, %v1727_v52  ;;  %v901_v23 = vmul.f32 %v1729_v53, %v1729_v53 }
  0xd9   :  { %2526 = vst [vmem:[#allocation4_spill] sm:$0xff] %v1737_v60  ;;  %v467_v62 = vadd.f32 %v466_v55, %v436_v50  ;;  %v928_v63 = vadd.f32 %v927_v57, %v897_v51  ;;  %v398_v0 = vadd.f32 %v1703_v40, %v397_v54  ;;  %v438_v1 = vmul.f32 %v1735_v59, %v1735_v59 }
  0xda   :  { %v859_v2 = vadd.f32 %v1705_v41, %v858_v56  ;;  %v1745_v3 = vpop.f32.mrf.mxu0  ;;  %v1747_v4 = vpop.f32.mrf.mxu1  ;;  %v899_v7 = vmul.f32 %v1737_v60, %v1737_v60 }
  0xdb   :  { %2527 = vst [vmem:[#allocation5_spill] sm:$0xff] %v1747_v4  ;;  %v399_v5 = vadd.f32 %v398_v0, %v1735_v59  ;;  %v468_v6 = vadd.f32 %v467_v62, %v437_v58  ;;  %v929_v8 = vadd.f32 %v928_v63, %v898_v61  ;;  %v441_v28 = vmul.f32 %v1745_v3, %v1745_v3 }
  0xdc   :  { %v860_v9 = vadd.f32 %v859_v2, %v1737_v60  ;;  %v1753_v10 = vpop.f32.mrf.mxu0  ;;  %v1755_v11 = vpop.f32.mrf.mxu1  ;;  %v902_v31 = vmul.f32 %v1747_v4, %v1747_v4 }
  0xdd   :  { %2528 = vst [vmem:[#allocation6_spill] sm:$0xff] %v1755_v11  ;;  %v469_v12 = vadd.f32 %v468_v6, %v438_v1  ;;  %v930_v13 = vadd.f32 %v929_v8, %v899_v7  ;;  %v400_v14 = vadd.f32 %v399_v5, %v1753_v10  ;;  %v439_v15 = vmul.f32 %v1753_v10, %v1753_v10 }
  0xde   :  { %v861_v16 = vadd.f32 %v860_v9, %v1755_v11  ;;  %v900_v17 = vmul.f32 %v1755_v11, %v1755_v11  ;;  %v1763_v18 = vpop.f32.mrf.mxu0  ;;  %v1765_v19 = vpop.f32.mrf.mxu1 }
  0xdf   :  { %2529 = vst [vmem:[#allocation7_spill] sm:$0xff] %v1765_v19  ;;  %v401_v21 = vadd.f32 %v1727_v52, %v400_v14  ;;  %v470_v22 = vadd.f32 %v469_v12, %v439_v15  ;;  %v444_v0 = vmul.f32 %v1763_v18, %v1763_v18  ;;  %v905_v5 = vmul.f32 %v1765_v19, %v1765_v19 }
  0xe0   :  { %v862_v24 = vadd.f32 %v1729_v53, %v861_v16  ;;  %v931_v25 = vadd.f32 %v930_v13, %v900_v17  ;;  %v1773_v26 = vpop.f32.mrf.mxu0  ;;  %v1775_v27 = vpop.f32.mrf.mxu1 }
  0xe1   :  { %2530 = vst [vmem:[#allocation8_spill] sm:$0xff] %v1775_v27  ;;  %v471_v29 = vadd.f32 %v470_v22, %v440_v20  ;;  %v402_v30 = vadd.f32 %v1745_v3, %v401_v21  ;;  %v442_v43 = vmul.f32 %v1773_v26, %v1773_v26  ;;  %v903_v48 = vmul.f32 %v1775_v27, %v1775_v27 }
  0xe2   :  { %v932_v32 = vadd.f32 %v931_v25, %v901_v23  ;;  %v863_v33 = vadd.f32 %v1747_v4, %v862_v24  ;;  %v1783_v34 = vpop.f32.mrf.mxu0  ;;  %v1785_v35 = vpop.f32.mrf.mxu1 }
  0xe3   :  { %2531 = vst [vmem:[#allocation9_spill] sm:$0xff] %v1785_v35  ;;  %v403_v42 = vadd.f32 %v402_v30, %v1773_v26  ;;  %v472_v46 = vadd.f32 %v471_v29, %v441_v28  ;;  %v445_v12 = vmul.f32 %v1783_v34, %v1783_v34  ;;  %v906_v15 = vmul.f32 %v1785_v35, %v1785_v35 }
  0xe4   :  { %v864_v47 = vadd.f32 %v863_v33, %v1775_v27  ;;  %v933_v49 = vadd.f32 %v932_v32, %v902_v31  ;;  %v1793_v50 = vpop.f32.mrf.mxu0  ;;  %v1795_v51 = vpop.f32.mrf.mxu1 }
  0xe5   :  { %2532 = vst [vmem:[#allocation10_spill] sm:$0xff] %v1795_v51  ;;  %v473_v54 = vadd.f32 %v472_v46, %v442_v43  ;;  %v404_v55 = vadd.f32 %v403_v42, %v1793_v50  ;;  %v443_v56 = vmul.f32 %v1793_v50, %v1793_v50  ;;  %v904_v57 = vmul.f32 %v1795_v51, %v1795_v51 }
  0xe6   :  { %v934_v58 = vadd.f32 %v933_v49, %v903_v48  ;;  %v865_v61 = vadd.f32 %v864_v47, %v1795_v51  ;;  %v1803_v62 = vpop.f32.mrf.mxu0  ;;  %v1805_v63 = vpop.f32.mrf.mxu1 }
  0xe7   :  { %2533 = vst [vmem:[#allocation11_spill] sm:$0xff] %v1805_v63  ;;  %v405_v1 = vadd.f32 %v1763_v18, %v404_v55  ;;  %v474_v2 = vadd.f32 %v473_v54, %v443_v56  ;;  %v448_v54 = vmul.f32 %v1803_v62, %v1803_v62 }
  0xe8   :  { %v866_v6 = vadd.f32 %v1765_v19, %v865_v61  ;;  %v935_v7 = vadd.f32 %v934_v58, %v904_v57  ;;  %v1813_v8 = vpop.f32.mrf.mxu0  ;;  %v1815_v9 = vpop.f32.mrf.mxu1  ;;  %v909_v57 = vmul.f32 %v1805_v63, %v1805_v63 }
  0xe9   :  { %2534 = vst [vmem:[#allocation12_spill] sm:$0xff] %v1815_v9  ;;  %v475_v13 = vadd.f32 %v474_v2, %v444_v0  ;;  %v406_v14 = vadd.f32 %v1783_v34, %v405_v1  ;;  %v446_v23 = vmul.f32 %v1813_v8, %v1813_v8  ;;  %v907_v28 = vmul.f32 %v1815_v9, %v1815_v9 }
  0xea   :  { %v936_v16 = vadd.f32 %v935_v7, %v905_v5  ;;  %v867_v17 = vadd.f32 %v1785_v35, %v866_v6  ;;  %v1823_v20 = vpop.f32.mrf.mxu0  ;;  %v1825_v21 = vpop.f32.mrf.mxu1 }
  0xeb   :  { %2535 = vst [vmem:[#allocation13_spill] sm:$0xff] %v1825_v21  ;;  %v407_v22 = vadd.f32 %v406_v14, %v1813_v8  ;;  %v476_v24 = vadd.f32 %v475_v13, %v445_v12  ;;  %v449_v2 = vmul.f32 %v1823_v20, %v1823_v20  ;;  %v910_v7 = vmul.f32 %v1825_v21, %v1825_v21 }
  0xec   :  { %v868_v25 = vadd.f32 %v867_v17, %v1815_v9  ;;  %v937_v29 = vadd.f32 %v936_v16, %v906_v15  ;;  %v1833_v30 = vpop.f32.mrf.mxu0  ;;  %v1835_v31 = vpop.f32.mrf.mxu1 }
  0xed   :  { %2536 = vst [vmem:[#allocation14_spill] sm:$0xff] %v1835_v31  ;;  %v477_v32 = vadd.f32 %v476_v24, %v446_v23  ;;  %v408_v33 = vadd.f32 %v407_v22, %v1833_v30  ;;  %v447_v42 = vmul.f32 %v1833_v30, %v1833_v30  ;;  %v908_v43 = vmul.f32 %v1835_v31, %v1835_v31 }
  0xee   :  { %v938_v46 = vadd.f32 %v937_v29, %v907_v28  ;;  %v869_v47 = vadd.f32 %v868_v25, %v1835_v31  ;;  %v1843_v48 = vpop.f32.mrf.mxu0  ;;  %v1845_v49 = vpop.f32.mrf.mxu1 }
  0xef   :  { %2537 = vst [vmem:[#allocation15_spill] sm:$0xff] %v1845_v49  ;;  %v409_v55 = vadd.f32 %v1803_v62, %v408_v33  ;;  %v478_v56 = vadd.f32 %v477_v32, %v447_v42 }
  0xf0   :  { %v870_v58 = vadd.f32 %v1805_v63, %v869_v47  ;;  %v939_v61 = vadd.f32 %v938_v46, %v908_v43  ;;  %v1853_v0 = vpop.f32.mrf.mxu0  ;;  %v1855_v1 = vpop.f32.mrf.mxu1 }
  0xf1   :  { %2538 = vst [vmem:[#allocation16_spill] sm:$0xff] %v1855_v1  ;;  %v479_v5 = vadd.f32 %v478_v56, %v448_v54  ;;  %v410_v6 = vadd.f32 %v1823_v20, %v409_v55  ;;  %v450_v17 = vmul.f32 %v1853_v0, %v1853_v0  ;;  %v911_v24 = vmul.f32 %v1855_v1, %v1855_v1 }
  0xf2   :  { %v940_v12 = vadd.f32 %v939_v61, %v909_v57  ;;  %v871_v13 = vadd.f32 %v1825_v21, %v870_v58  ;;  %v1863_v14 = vpop.f32.mrf.mxu0  ;;  %v1865_v15 = vpop.f32.mrf.mxu1  ;;  %v452_v56 = vmul.f32 %v1843_v48, %v1843_v48  ;;  %v913_v61 = vmul.f32 %v1845_v49, %v1845_v49 }
  0xf3   :  { %2539 = vst [vmem:[#allocation17_spill] sm:$0xff] %v1865_v15  ;;  %v411_v16 = vadd.f32 %v410_v6, %v1853_v0  ;;  %v480_v22 = vadd.f32 %v479_v5, %v449_v2 }
  0xf4   :  { %v872_v23 = vadd.f32 %v871_v13, %v1855_v1  ;;  %v941_v25 = vadd.f32 %v940_v12, %v910_v7  ;;  %v1873_v28 = vpop.f32.mrf.mxu0  ;;  %v1875_v29 = vpop.f32.mrf.mxu1  ;;  %v453_v12 = vmul.f32 %v1863_v14, %v1863_v14 }
  0xf5   :  { %2540 = vst [vmem:[#allocation18_spill] sm:$0xff] %v1875_v29  ;;  %v481_v32 = vadd.f32 %v480_v22, %v450_v17  ;;  %v412_v33 = vadd.f32 %v411_v16, %v1873_v28  ;;  %v451_v42 = vmul.f32 %v1873_v28, %v1873_v28  ;;  %v912_v43 = vmul.f32 %v1875_v29, %v1875_v29 }
  0xf6   :  { %v942_v46 = vadd.f32 %v941_v25, %v911_v24  ;;  %v873_v47 = vadd.f32 %v872_v23, %v1875_v29  ;;  %v1883_v54 = vpop.f32.mrf.mxu0  ;;  %v1885_v55 = vpop.f32.mrf.mxu1  ;;  %v914_v17 = vmul.f32 %v1865_v15, %v1865_v15 }
  0xf7   :  { %2541 = vst [vmem:[#allocation19_spill] sm:$0xff] %v1885_v55  ;;  %v413_v57 = vadd.f32 %v1843_v48, %v412_v33  ;;  %v482_v58 = vadd.f32 %v481_v32, %v451_v42 }
  0xf8   :  { %v874_v2 = vadd.f32 %v1845_v49, %v873_v47  ;;  %v943_v5 = vadd.f32 %v942_v46, %v912_v43  ;;  %v1893_v6 = vpop.f32.mrf.mxu0  ;;  %v1895_v7 = vpop.f32.mrf.mxu1 }
  0xf9   :  { %2542 = vst [vmem:[#allocation20_spill] sm:$0xff] %v1895_v7  ;;  %v483_v13 = vadd.f32 %v482_v58, %v452_v56  ;;  %v414_v16 = vadd.f32 %v1863_v14, %v413_v57  ;;  %v454_v33 = vmul.f32 %v1893_v6, %v1893_v6  ;;  %v915_v46 = vmul.f32 %v1895_v7, %v1895_v7 }
  0xfa   :  { %v944_v22 = vadd.f32 %v943_v5, %v913_v61  ;;  %v875_v23 = vadd.f32 %v1865_v15, %v874_v2  ;;  %v1903_v24 = vpop.f32.mrf.mxu0  ;;  %v1905_v25 = vpop.f32.mrf.mxu1 }
  0xfb   :  { %2543 = vst [vmem:[#allocation21_spill] sm:$0xff] %v1905_v25  ;;  %v415_v32 = vadd.f32 %v414_v16, %v1893_v6  ;;  %v484_v42 = vadd.f32 %v483_v13, %v453_v12 }
  0xfc   :  { %v876_v43 = vadd.f32 %v875_v23, %v1895_v7  ;;  %v945_v47 = vadd.f32 %v944_v22, %v914_v17  ;;  %v1913_v56 = vpop.f32.mrf.mxu0  ;;  %v1915_v57 = vpop.f32.mrf.mxu1  ;;  %v456_v17 = vmul.f32 %v1883_v54, %v1883_v54 }
  0xfd   :  { %2544 = vst [vmem:[#allocation22_spill] sm:$0xff] %v1915_v57  ;;  %v485_v58 = vadd.f32 %v484_v42, %v454_v33  ;;  %v416_v61 = vadd.f32 %v415_v32, %v1913_v56  ;;  %v455_v2 = vmul.f32 %v1913_v56, %v1913_v56  ;;  %v916_v5 = vmul.f32 %v1915_v57, %v1915_v57 }
  0xfe   :  { %v946_v12 = vadd.f32 %v945_v47, %v915_v46  ;;  %v877_v13 = vadd.f32 %v876_v43, %v1915_v57  ;;  %v1923_v16 = vpop.f32.mrf.mxu0  ;;  %v1925_v23 = vpop.f32.mrf.mxu1  ;;  %v917_v32 = vmul.f32 %v1885_v55, %v1885_v55  ;;  %v457_v43 = vmul.f32 %v1903_v24, %v1903_v24 }
  0xff   :  { %2545 = vst [vmem:[#allocation23_spill] sm:$0xff] %v1925_v23  ;;  %v417_v22 = vadd.f32 %v1883_v54, %v416_v61  ;;  %v486_v33 = vadd.f32 %v485_v58, %v455_v2  ;;  %v918_v61 = vmul.f32 %v1905_v25, %v1905_v25 }
 0x100   :  { %v878_v42 = vadd.f32 %v1885_v55, %v877_v13  ;;  %v947_v7 = vadd.f32 %v946_v12, %v916_v5  ;;  %v1933_v15 = vpop.f32.mrf.mxu0  ;;  %v1935_v46 = vpop.f32.mrf.mxu1 }
 0x101   :  { %2546 = vst [vmem:[#allocation24_spill] sm:$0xff] %v1935_v46  ;;  %v487_v47 = vadd.f32 %v486_v33, %v456_v17  ;;  %v418_v57 = vadd.f32 %v1903_v24, %v417_v22  ;;  %v458_v12 = vmul.f32 %v1933_v15, %v1933_v15  ;;  %v919_v22 = vmul.f32 %v1935_v46, %v1935_v46 }
 0x102   :  { %v948_v58 = vadd.f32 %v947_v7, %v917_v32  ;;  %v879_v2 = vadd.f32 %v1905_v25, %v878_v42  ;;  %v1943_v49 = vpop.f32.mrf.mxu0  ;;  %v1945_v13 = vpop.f32.mrf.mxu1 }
 0x103   :  { %2547 = vst [vmem:[#allocation25_spill] sm:$0xff] %v1945_v13  ;;  %v419_v5 = vadd.f32 %v418_v57, %v1933_v15  ;;  %v488_v55 = vadd.f32 %v487_v47, %v457_v43 }
 0x104   :  { %v880_v17 = vadd.f32 %v879_v2, %v1935_v46  ;;  %v949_v33 = vadd.f32 %v948_v58, %v918_v61  ;;  %v1953_v29 = vpop.f32.mrf.mxu0  ;;  %v1955_v7 = vpop.f32.mrf.mxu1  ;;  %v460_v61 = vmul.f32 %v1923_v16, %v1923_v16 }
 0x105   :  { %2548 = vst [vmem:[#allocation26_spill] sm:$0xff] %v1955_v7  ;;  %v489_v32 = vadd.f32 %v488_v55, %v458_v12  ;;  %v420_v42 = vadd.f32 %v419_v5, %v1953_v29  ;;  %v459_v57 = vmul.f32 %v1953_v29, %v1953_v29  ;;  %v920_v25 = vmul.f32 %v1955_v7, %v1955_v7 }
 0x106   :  { %v950_v43 = vadd.f32 %v949_v33, %v919_v22  ;;  %v881_v47 = vadd.f32 %v880_v17, %v1955_v7  ;;  %v1963_v2 = vpop.f32.mrf.mxu0  ;;  %v1965_v46 = vpop.f32.mrf.mxu1  ;;  %v921_v5 = vmul.f32 %v1925_v23, %v1925_v23  ;;  %v461_v17 = vmul.f32 %v1943_v49, %v1943_v49 }
 0x107   :  { %2549 = vst [vmem:[#allocation27_spill] sm:$0xff] %v1965_v46  ;;  %v421_v55 = vadd.f32 %v1923_v16, %v420_v42  ;;  %v490_v58 = vadd.f32 %v489_v32, %v459_v57  ;;  %v922_v42 = vmul.f32 %v1945_v13, %v1945_v13 }
 0x108   :  { %v882_v12 = vadd.f32 %v1925_v23, %v881_v47  ;;  %v951_v1 = vadd.f32 %v950_v43, %v920_v25  ;;  %v1973_v21 = vpop.f32.mrf.mxu0  ;;  %v1975_v22 = vpop.f32.mrf.mxu1 }
 0x109   :  { %2550 = vst [vmem:[#allocation28_spill] sm:$0xff] %v1975_v22  ;;  %v491_v33 = vadd.f32 %v490_v58, %v460_v61  ;;  %v422_v7 = vadd.f32 %v1943_v49, %v421_v55  ;;  %v462_v43 = vmul.f32 %v1973_v21, %v1973_v21  ;;  %v923_v55 = vmul.f32 %v1975_v22, %v1975_v22 }
 0x10a   :  { %v952_v32 = vadd.f32 %v951_v1, %v921_v5  ;;  %v883_v57 = vadd.f32 %v1945_v13, %v882_v12  ;;  %v1983_v63 = vpop.f32.mrf.mxu0  ;;  %v1985_v47 = vpop.f32.mrf.mxu1 }
 0x10b   :  { %v423_v25 = vadd.f32 %v422_v7, %v1973_v21  ;;  %v492_v23 = vadd.f32 %v491_v33, %v461_v17 }
 0x10c   :  { %v884_v61 = vadd.f32 %v883_v57, %v1975_v22  ;;  %v953_v58 = vadd.f32 %v952_v32, %v922_v42  ;;  %v1993_v31 = vpop.f32.mrf.mxu0  ;;  %v1995_v1 = vpop.f32.mrf.mxu1  ;;  %v464_v57 = vmul.f32 %v1963_v2, %v1963_v2  ;;  %v465_v22 = vmul.f32 %v1983_v63, %v1983_v63 }
 0x10d   :  { %2551 = vst [vmem:[#allocation29_spill] sm:$0xff] %v1995_v1  ;;  %v493_v5 = vadd.f32 %v492_v23, %v462_v43  ;;  %v424_v12 = vadd.f32 %v423_v25, %v1993_v31  ;;  %v463_v7 = vmul.f32 %v1993_v31, %v1993_v31  ;;  %v924_v13 = vmul.f32 %v1995_v1, %v1995_v1 }
 0x10e   :  { %v954_v17 = vadd.f32 %v953_v58, %v923_v55  ;;  %v885_v33 = vadd.f32 %v884_v61, %v1995_v1  ;;  %v925_v23 = vmul.f32 %v1965_v46, %v1965_v46  ;;  %v926_v61 = vmul.f32 %v1985_v47, %v1985_v47 }
 0x10f   :  { %v425_v42 = vadd.f32 %v1963_v2, %v424_v12  ;;  %v494_v32 = vadd.f32 %v493_v5, %v463_v7 }
 0x110   :  { %v886_v25 = vadd.f32 %v1965_v46, %v885_v33  ;;  %v955_v43 = vadd.f32 %v954_v17, %v924_v13 }
 0x111   :  { %v426_v9 = vadd.f32 %v1983_v63, %v425_v42  ;;  %v495_v55 = vadd.f32 %v494_v32, %v464_v57 }
 0x112   :  { %v887_v58 = vadd.f32 %v1985_v47, %v886_v25  ;;  %v956_v1 = vadd.f32 %v955_v43, %v925_v23 }
 0x113   :  { %v427_v12 = vrot.slane %v426_v9, 4  ;;  %v496_v5 = vadd.f32 %v495_v55, %v465_v22 }
 0x114   :  { %v888_v7 = vrot.slane %v887_v58, 4  ;;  %v957_v35 = vadd.f32 %v956_v1, %v926_v61 }
 0x115   :  { %v428_v19 = vadd.f32 %v427_v12, %v426_v9  ;;  %v497_v51 = vrot.slane %v496_v5, 4 }
 0x116   :  { %v889_v33 = vadd.f32 %v888_v7, %v887_v58  ;;  %v958_v13 = vrot.slane %v957_v35, 4 }
 0x117   :  { %v429_v17 = vrot.slane %v428_v19, 2  ;;  %v498_v46 = vadd.f32 %v497_v51, %v496_v5 }
 0x118   :  { %v890_v27 = vrot.slane %v889_v33, 2  ;;  %v959_v4 = vadd.f32 %v958_v13, %v957_v35 }
 0x119   :  { %v430_v42 = vadd.f32 %v429_v17, %v428_v19  ;;  %v499_v57 = vrot.slane %v498_v46, 2 }
 0x11a   :  { %v891_v32 = vadd.f32 %v890_v27, %v889_v33  ;;  %v960_v53 = vrot.slane %v959_v4, 2  ;;  %v1010_v27 = vlaneseq }
 0x11b   :  { %v431_v11 = vrot.slane %v430_v42, 1  ;;  %v500_v60 = vadd.f32 %v499_v57, %v498_v46 }
 0x11c   :  { %v892_v25 = vrot.slane %v891_v32, 1  ;;  %v961_v23 = vadd.f32 %v960_v53, %v959_v4  ;;  %v1011_v33 = vshrl.u32 %v1010_v27, 7  ;;  %v970_v53 = vld [vmem:[%s2495_s2] sm:$0x1] }
 0x11d   :  { %v432_v43 = vadd.f32 %v431_v11, %v430_v42  ;;  %v501_v22 = vrot.slane %v500_v60, 1 }
 0x11e   :  { %v893_v55 = vadd.f32 %v892_v25, %v891_v32  ;;  %v962_v1 = vrot.slane %v961_v23, 1  ;;  %v1012_v4 = vsub.s32 0, %v1011_v33 }
 0x11f   :  { %v502_v9 = vadd.f32 %v501_v22, %v500_v60  ;;  %v974_v60 = vld [vmem:[%s2496_s3] sm:$0x1] }
 0x120   :  { %v894_v61 = vadd.f32 %v893_v55, %v432_v43  ;;  %v963_v58 = vadd.f32 %v962_v1, %v961_v23 }
 0x122   :  { %v964_v12 = vadd.f32 %v963_v58, %v502_v9  ;;  %v965_v7 = vmul.f32 0.001953125, %v894_v61 }
 0x124   :  { %v966_v51 = vmul.f32 0.001953125, %v964_v12  ;;  %v967_v5 = vmul.f32 %v965_v7, %v965_v7 }
 0x126   :  { %v968_v35 = vsub.f32 %v966_v51, %v967_v5 }
 0x128   :  { %v969_v19 = vmax.f32 %v968_v35, 0.0 }
 0x12a   :  { %v971_v13 = vadd.f32 1e-05, %v969_v19 }
 0x12c   :  { %1531 = vrsqrt.f32 %v971_v13 }
 0x139   :  { %v1532_v11 = vpop.eup %1531 }
 0x13a   :  { %v973_v46 = vmul.f32 %v1532_v11, %v970_v53 }
 0x13c   :  { %v975_v17 = vmul.f32 %v973_v46, %v965_v7  ;;  %v2021_v42 = vrot.slane %v973_v46, %v1012_v4 }
 0x13e   :  { %v976_v57 = vsub.f32 %v974_v60, %v975_v17  ;;  %v1015_v32 = vmul.f32 %v2021_v42, %v1699_v38  ;;  %v1016_v25 = vmul.f32 %v2021_v42, %v1711_v44  ;;  %v1017_v23 = vmul.f32 %v1695_v36, %v2021_v42 }
 0x13f   :  { %v1018_v43 = vmul.f32 %v1703_v40, %v2021_v42  ;;  %v1019_v22 = vmul.f32 %v2021_v42, %v1735_v59  ;;  %v1020_v55 = vmul.f32 %v2021_v42, %v1753_v10  ;;  %v1021_v1 = vmul.f32 %v1727_v52, %v2021_v42 }
 0x140   :  { %v1022_v38 = vmul.f32 %v1745_v3, %v2021_v42  ;;  %v1023_v44 = vmul.f32 %v2021_v42, %v1773_v26  ;;  %v1024_v36 = vmul.f32 %v2021_v42, %v1793_v50  ;;  %v1025_v40 = vmul.f32 %v1763_v18, %v2021_v42 }
 0x141   :  { %v1026_v59 = vmul.f32 %v1783_v34, %v2021_v42  ;;  %v1027_v10 = vmul.f32 %v2021_v42, %v1813_v8  ;;  %v1028_v52 = vmul.f32 %v2021_v42, %v1833_v30  ;;  %v1029_v3 = vmul.f32 %v1803_v62, %v2021_v42 }
 0x142   :  { %v1030_v26 = vmul.f32 %v1823_v20, %v2021_v42  ;;  %v1031_v50 = vmul.f32 %v2021_v42, %v1853_v0  ;;  %v1032_v18 = vmul.f32 %v2021_v42, %v1873_v28  ;;  %v1033_v34 = vmul.f32 %v1843_v48, %v2021_v42 }
 0x143   :  { %v1034_v8 = vmul.f32 %v1863_v14, %v2021_v42  ;;  %v1035_v30 = vmul.f32 %v2021_v42, %v1893_v6  ;;  %v1036_v62 = vmul.f32 %v2021_v42, %v1913_v56  ;;  %v1037_v20 = vmul.f32 %v1883_v54, %v2021_v42 }
 0x144   :  { %v1038_v0 = vmul.f32 %v1903_v24, %v2021_v42  ;;  %v1039_v28 = vmul.f32 %v2021_v42, %v1933_v15  ;;  %v1040_v48 = vmul.f32 %v2021_v42, %v1953_v29  ;;  %v1041_v14 = vmul.f32 %v1923_v16, %v2021_v42  ;;  %v2552_v16 = vld [vmem:[#allocation4_spill] sm:$0xff] }
 0x145   :  { %v1042_v6 = vmul.f32 %v1943_v49, %v2021_v42  ;;  %v1043_v56 = vmul.f32 %v2021_v42, %v1973_v21  ;;  %v1044_v54 = vmul.f32 %v2021_v42, %v1993_v31  ;;  %v1045_v24 = vmul.f32 %v1963_v2, %v2021_v42  ;;  %v2553_v2 = vld [vmem:[#allocation6_spill] sm:$0xff] }
 0x146   :  { %v1046_v15 = vmul.f32 %v1983_v63, %v2021_v42  ;;  %v2087_v9 = vrot.slane %v976_v57, %v1012_v4  ;;  %v2091_v29 = vmul.f32 %v2021_v42, %v1701_v39  ;;  %v2095_v49 = vmul.f32 %v2021_v42, %v1713_v45 }
 0x147   :  { %v2099_v21 = vmul.f32 %v1697_v37, %v2021_v42  ;;  %v2103_v31 = vmul.f32 %v1705_v41, %v2021_v42  ;;  %v2107_v63 = vmul.f32 %v2021_v42, %v2552_v16  ;;  %v2111_v39 = vmul.f32 %v2021_v42, %v2553_v2 }
 0x148   :  { %v1053_v61 = vadd.f32 %v2087_v9, %v1015_v32  ;;  %v1054_v45 = vadd.f32 %v2087_v9, %v1016_v25  ;;  %v1055_v58 = vadd.f32 %v2087_v9, %v1017_v23  ;;  %v1056_v37 = vadd.f32 %v2087_v9, %v1018_v43 }
 0x149   :  { %v1057_v12 = vadd.f32 %v2087_v9, %v1019_v22  ;;  %v1058_v41 = vadd.f32 %v2087_v9, %v1020_v55  ;;  %v1059_v7 = vadd.f32 %v2087_v9, %v1021_v1  ;;  %v1060_v51 = vadd.f32 %v2087_v9, %v1022_v38 }
 0x14a   :  { %v1061_v5 = vadd.f32 %v2087_v9, %v1023_v44  ;;  %v1062_v35 = vadd.f32 %v2087_v9, %v1024_v36  ;;  %v1063_v19 = vadd.f32 %v2087_v9, %v1025_v40  ;;  %v1064_v13 = vadd.f32 %v2087_v9, %v1026_v59 }
 0x14b   :  { %v1065_v27 = vadd.f32 %v2087_v9, %v1027_v10  ;;  %v1066_v33 = vadd.f32 %v2087_v9, %v1028_v52  ;;  %v1067_v53 = vadd.f32 %v2087_v9, %v1029_v3  ;;  %v1068_v4 = vadd.f32 %v2087_v9, %v1030_v26 }
 0x14c   :  { %v1069_v11 = vadd.f32 %v2087_v9, %v1031_v50  ;;  %v1070_v46 = vadd.f32 %v2087_v9, %v1032_v18  ;;  %v1071_v60 = vadd.f32 %v2087_v9, %v1033_v34  ;;  %v1072_v17 = vadd.f32 %v2087_v9, %v1034_v8 }
 0x14d   :  { %v2134_v57 = vadd.f32 %v2087_v9, %v1035_v30  ;;  %v2137_v32 = vadd.f32 %v2087_v9, %v1036_v62  ;;  %v2140_v25 = vadd.f32 %v2087_v9, %v1037_v20  ;;  %v2143_v23 = vadd.f32 %v2087_v9, %v1038_v0 }
 0x14e   :  { %v2146_v43 = vadd.f32 %v2087_v9, %v1039_v28  ;;  %v2149_v22 = vadd.f32 %v2087_v9, %v1040_v48  ;;  %v2152_v55 = vadd.f32 %v2087_v9, %v1041_v14  ;;  %v2155_v1 = vadd.f32 %v2087_v9, %v1042_v6 }
 0x14f   :  { %v2158_v38 = vadd.f32 %v2087_v9, %v1043_v56  ;;  %v2161_v44 = vadd.f32 %v2087_v9, %v1044_v54  ;;  %v2164_v36 = vadd.f32 %v2087_v9, %v1045_v24  ;;  %v2167_v40 = vadd.f32 %v2087_v9, %v1046_v15 }
 0x150   :  { %v1085_v59 = vmax.f32 %v1053_v61, 0.0  ;;  %v1086_v10 = vmax.f32 %v1054_v45, 0.0  ;;  %v1087_v52 = vmax.f32 %v1055_v58, 0.0  ;;  %v1088_v3 = vmax.f32 %v1056_v37, 0.0 }
 0x151   :  { %v1089_v26 = vmax.f32 %v1057_v12, 0.0  ;;  %v1090_v50 = vmax.f32 %v1058_v41, 0.0  ;;  %v1091_v18 = vmax.f32 %v1059_v7, 0.0  ;;  %v1092_v34 = vmax.f32 %v1060_v51, 0.0 }
 0x152   :  { %v1093_v8 = vmax.f32 %v1061_v5, 0.0  ;;  %v1094_v30 = vmax.f32 %v1062_v35, 0.0  ;;  %v1095_v62 = vmax.f32 %v1063_v19, 0.0  ;;  %v1096_v20 = vmax.f32 %v1064_v13, 0.0  ;;  %1117 = vst [vmem:[%s2497_s4] sm:$0xff] %v1085_v59  ;;  %1118 = vst [vmem:[%s2497_s4 + $0x8] sm:$0xff] %v1086_v10  ;;  %v2554_v35 = vld [vmem:[#allocation3_spill] sm:$0xff] }
 0x153   :  { %1119 = vst [vmem:[%s2497_s4 + $0x10] sm:$0xff] %v1087_v52  ;;  %1120 = vst [vmem:[%s2497_s4 + $0x18] sm:$0xff] %v1088_v3  ;;  %v1097_v0 = vmax.f32 %v1065_v27, 0.0  ;;  %v1098_v28 = vmax.f32 %v1066_v33, 0.0  ;;  %v1099_v48 = vmax.f32 %v1067_v53, 0.0  ;;  %v1100_v14 = vmax.f32 %v1068_v4, 0.0 }
 0x154   :  { %1121 = vst [vmem:[%s2497_s4 + $0x20] sm:$0xff] %v1089_v26  ;;  %1122 = vst [vmem:[%s2497_s4 + $0x28] sm:$0xff] %v1090_v50  ;;  %v1101_v6 = vmax.f32 %v1069_v11, 0.0  ;;  %v1102_v56 = vmax.f32 %v1070_v46, 0.0  ;;  %v1103_v54 = vmax.f32 %v1071_v60, 0.0  ;;  %v1104_v24 = vmax.f32 %v1072_v17, 0.0 }
 0x155   :  { %1123 = vst [vmem:[%s2497_s4 + $0x30] sm:$0xff] %v1091_v18  ;;  %1124 = vst [vmem:[%s2497_s4 + $0x38] sm:$0xff] %v1092_v34  ;;  %v1105_v15 = vmax.f32 %v2134_v57, 0.0  ;;  %v1106_v16 = vmax.f32 %v2137_v32, 0.0  ;;  %v1107_v2 = vmax.f32 %v2140_v25, 0.0  ;;  %v1108_v61 = vmax.f32 %v2143_v23, 0.0 }
 0x156   :  { %1125 = vst [vmem:[%s2497_s4 + $0x40] sm:$0xff] %v1093_v8  ;;  %1126 = vst [vmem:[%s2497_s4 + $0x48] sm:$0xff] %v1094_v30  ;;  %v1109_v45 = vmax.f32 %v2146_v43, 0.0  ;;  %v1110_v58 = vmax.f32 %v2149_v22, 0.0  ;;  %v1111_v37 = vmax.f32 %v2152_v55, 0.0  ;;  %v1112_v12 = vmax.f32 %v2155_v1, 0.0 }
 0x157   :  { %1127 = vst [vmem:[%s2497_s4 + $0x50] sm:$0xff] %v1095_v62  ;;  %1128 = vst [vmem:[%s2497_s4 + $0x58] sm:$0xff] %v1096_v20  ;;  %v1113_v41 = vmax.f32 %v2158_v38, 0.0  ;;  %v1114_v7 = vmax.f32 %v2161_v44, 0.0  ;;  %v1115_v51 = vmax.f32 %v2164_v36, 0.0  ;;  %v1116_v5 = vmax.f32 %v2167_v40, 0.0 }
 0x158   :  { %1129 = vst [vmem:[%s2497_s4 + $0x60] sm:$0xff] %v1097_v0  ;;  %1130 = vst [vmem:[%s2497_s4 + $0x68] sm:$0xff] %v1098_v28  ;;  %v1187_v19 = vmul.f32 %v2554_v35, %v2021_v42  ;;  %v2555_v13 = vld [vmem:[#allocation5_spill] sm:$0xff]  ;;  %v2556_v33 = vld [vmem:[#allocation8_spill] sm:$0xff]  ;;  %v1217_v35 = vadd.f32 %v2107_v63, %v2087_v9 }
 0x159   :  { %1131 = vst [vmem:[%s2497_s4 + $0x70] sm:$0xff] %v1099_v48  ;;  %1132 = vst [vmem:[%s2497_s4 + $0x78] sm:$0xff] %v1100_v14  ;;  %v1188_v27 = vmul.f32 %v2555_v13, %v2021_v42  ;;  %v1189_v53 = vmul.f32 %v2021_v42, %v2556_v33  ;;  %v2557_v4 = vld [vmem:[#allocation10_spill] sm:$0xff]  ;;  %v2558_v46 = vld [vmem:[#allocation7_spill] sm:$0xff]  ;;  %v1218_v13 = vadd.f32 %v2111_v39, %v2087_v9 }
 0x15a   :  { %1133 = vst [vmem:[%s2497_s4 + $0x80] sm:$0xff] %v1101_v6  ;;  %1134 = vst [vmem:[%s2497_s4 + $0x88] sm:$0xff] %v1102_v56  ;;  %v1190_v11 = vmul.f32 %v2021_v42, %v2557_v4  ;;  %v1191_v60 = vmul.f32 %v2558_v46, %v2021_v42  ;;  %v2559_v17 = vld [vmem:[#allocation9_spill] sm:$0xff]  ;;  %v2560_v32 = vld [vmem:[#allocation12_spill] sm:$0xff] }
 0x15b   :  { %1135 = vst [vmem:[%s2497_s4 + $0x90] sm:$0xff] %v1103_v54  ;;  %1136 = vst [vmem:[%s2497_s4 + $0x98] sm:$0xff] %v1104_v24  ;;  %v1192_v57 = vmul.f32 %v2559_v17, %v2021_v42  ;;  %v1193_v25 = vmul.f32 %v2021_v42, %v2560_v32  ;;  %v2561_v23 = vld [vmem:[#allocation14_spill] sm:$0xff]  ;;  %v2562_v22 = vld [vmem:[#allocation11_spill] sm:$0xff] }
 0x15c   :  { %1137 = vst [vmem:[%s2497_s4 + $0xa0] sm:$0xff] %v1105_v15  ;;  %1138 = vst [vmem:[%s2497_s4 + $0xa8] sm:$0xff] %v1106_v16  ;;  %v1194_v43 = vmul.f32 %v2021_v42, %v2561_v23  ;;  %v1195_v55 = vmul.f32 %v2562_v22, %v2021_v42  ;;  %v2563_v1 = vld [vmem:[#allocation13_spill] sm:$0xff]  ;;  %v2564_v44 = vld [vmem:[#allocation16_spill] sm:$0xff]  ;;  %v1223_v33 = vadd.f32 %v1191_v60, %v2087_v9 }
 0x15d   :  { %1139 = vst [vmem:[%s2497_s4 + $0xb0] sm:$0xff] %v1107_v2  ;;  %1140 = vst [vmem:[%s2497_s4 + $0xb8] sm:$0xff] %v1108_v61  ;;  %v1196_v38 = vmul.f32 %v2563_v1, %v2021_v42  ;;  %v1197_v36 = vmul.f32 %v2021_v42, %v2564_v44  ;;  %v2565_v40 = vld [vmem:[#allocation18_spill] sm:$0xff]  ;;  %v2566_v10 = vld [vmem:[#allocation15_spill] sm:$0xff] }
 0x15e   :  { %1141 = vst [vmem:[%s2497_s4 + $0xc0] sm:$0xff] %v1109_v45  ;;  %1142 = vst [vmem:[%s2497_s4 + $0xc8] sm:$0xff] %v1110_v58  ;;  %v1198_v59 = vmul.f32 %v2021_v42, %v2565_v40  ;;  %v1199_v52 = vmul.f32 %v2566_v10, %v2021_v42  ;;  %v2567_v3 = vld [vmem:[#allocation17_spill] sm:$0xff]  ;;  %v2568_v50 = vld [vmem:[#allocation20_spill] sm:$0xff]  ;;  %v1226_v4 = vadd.f32 %v1194_v43, %v2087_v9  ;;  %v1249_v10 = vmax.f32 %v1217_v35, 0.0 }
 0x15f   :  { %1143 = vst [vmem:[%s2497_s4 + $0xd0] sm:$0xff] %v1111_v37  ;;  %1144 = vst [vmem:[%s2497_s4 + $0xd8] sm:$0xff] %v1112_v12  ;;  %v1200_v26 = vmul.f32 %v2567_v3, %v2021_v42  ;;  %v1201_v18 = vmul.f32 %v2021_v42, %v2568_v50  ;;  %v2569_v34 = vld [vmem:[#allocation22_spill] sm:$0xff]  ;;  %v2570_v30 = vld [vmem:[#allocation19_spill] sm:$0xff]  ;;  %v1212_v12 = vmul.f32 %v1985_v47, %v2021_v42 }
 0x160   :  { %1145 = vst [vmem:[%s2497_s4 + $0xe0] sm:$0xff] %v1113_v41  ;;  %1146 = vst [vmem:[%s2497_s4 + $0xe8] sm:$0xff] %v1114_v7  ;;  %v1202_v8 = vmul.f32 %v2021_v42, %v2569_v34  ;;  %v1203_v62 = vmul.f32 %v2570_v30, %v2021_v42  ;;  %v2571_v20 = vld [vmem:[#allocation21_spill] sm:$0xff]  ;;  %v2572_v28 = vld [vmem:[#allocation24_spill] sm:$0xff]  ;;  %v1213_v41 = vadd.f32 %v2091_v29, %v2087_v9  ;;  %v1258_v30 = vmax.f32 %v1226_v4, 0.0 }
 0x161   :  { %1147 = vst [vmem:[%s2497_s4 + $0xf0] sm:$0xff] %v1115_v51  ;;  %1148 = vst [vmem:[%s2497_s4 + $0xf8] sm:$0xff] %v1116_v5  ;;  %v1204_v0 = vmul.f32 %v2571_v20, %v2021_v42  ;;  %v1205_v48 = vmul.f32 %v2021_v42, %v2572_v28  ;;  %v2573_v14 = vld [vmem:[#allocation26_spill] sm:$0xff]  ;;  %v2574_v56 = vld [vmem:[#allocation23_spill] sm:$0xff]  ;;  %v1214_v7 = vadd.f32 %v2095_v49, %v2087_v9 }
 0x162   :  { %v1206_v6 = vmul.f32 %v2021_v42, %v2573_v14  ;;  %v1207_v54 = vmul.f32 %v2574_v56, %v2021_v42  ;;  %v2575_v24 = vld [vmem:[#allocation25_spill] sm:$0xff]  ;;  %v2576_v16 = vld [vmem:[#allocation28_spill] sm:$0xff]  ;;  %v2578_v58 = vld [vmem:[#allocation27_spill] sm:$0xff]  ;;  %v1215_v51 = vadd.f32 %v2099_v21, %v2087_v9  ;;  %v1216_v5 = vadd.f32 %v2103_v31, %v2087_v9  ;;  %1281 = vst [vmem:[%s2497_s4 + $0x120] sm:$0xff] %v1249_v10 }
 0x163   :  { %v1208_v15 = vmul.f32 %v2575_v24, %v2021_v42  ;;  %v1209_v2 = vmul.f32 %v2021_v42, %v2576_v16  ;;  %v2577_v61 = vld [vmem:[#allocation29_spill] sm:$0xff]  ;;  %v1211_v37 = vmul.f32 %v2578_v58, %v2021_v42  ;;  %v1219_v47 = vadd.f32 %v1187_v19, %v2087_v9  ;;  %1290 = vst [vmem:[%s2497_s4 + $0x168] sm:$0xff] %v1258_v30 }
 0x164   :  { %v1210_v45 = vmul.f32 %v2021_v42, %v2577_v61  ;;  %v1220_v42 = vadd.f32 %v1188_v27, %v2087_v9  ;;  %v1221_v29 = vadd.f32 %v1189_v53, %v2087_v9  ;;  %v1222_v49 = vadd.f32 %v1190_v11, %v2087_v9 }
 0x165   :  { %v1224_v21 = vadd.f32 %v1192_v57, %v2087_v9  ;;  %v1225_v31 = vadd.f32 %v1193_v25, %v2087_v9  ;;  %v1227_v63 = vadd.f32 %v1195_v55, %v2087_v9  ;;  %v1228_v39 = vadd.f32 %v1196_v38, %v2087_v9 }
 0x166   :  { %v1229_v19 = vadd.f32 %v1197_v36, %v2087_v9  ;;  %v1230_v27 = vadd.f32 %v1198_v59, %v2087_v9  ;;  %v1231_v53 = vadd.f32 %v1199_v52, %v2087_v9  ;;  %v1232_v11 = vadd.f32 %v1200_v26, %v2087_v9 }
 0x167   :  { %v1233_v46 = vadd.f32 %v1201_v18, %v2087_v9  ;;  %v1234_v60 = vadd.f32 %v1202_v8, %v2087_v9  ;;  %v2358_v17 = vadd.f32 %v1203_v62, %v2087_v9  ;;  %v2361_v57 = vadd.f32 %v1204_v0, %v2087_v9 }
 0x168   :  { %v2364_v32 = vadd.f32 %v1205_v48, %v2087_v9  ;;  %v2367_v25 = vadd.f32 %v1206_v6, %v2087_v9  ;;  %v2370_v23 = vadd.f32 %v1207_v54, %v2087_v9  ;;  %v2373_v43 = vadd.f32 %v1208_v15, %v2087_v9 }
 0x169   :  { %v2376_v22 = vadd.f32 %v1209_v2, %v2087_v9  ;;  %v2379_v55 = vadd.f32 %v1210_v45, %v2087_v9  ;;  %v2382_v1 = vadd.f32 %v1211_v37, %v2087_v9  ;;  %v2385_v38 = vadd.f32 %v1212_v12, %v2087_v9 }
 0x16a   :  { %v1245_v44 = vmax.f32 %v1213_v41, 0.0  ;;  %v1246_v36 = vmax.f32 %v1214_v7, 0.0  ;;  %v1247_v40 = vmax.f32 %v1215_v51, 0.0  ;;  %v1248_v59 = vmax.f32 %v1216_v5, 0.0 }
 0x16b   :  { %v1250_v52 = vmax.f32 %v1218_v13, 0.0  ;;  %v1251_v3 = vmax.f32 %v1219_v47, 0.0  ;;  %v1252_v26 = vmax.f32 %v1220_v42, 0.0  ;;  %v1253_v50 = vmax.f32 %v1221_v29, 0.0 }
 0x16c   :  { %v1254_v18 = vmax.f32 %v1222_v49, 0.0  ;;  %1277 = vst [vmem:[%s2497_s4 + $0x100] sm:$0xff] %v1245_v44  ;;  %1278 = vst [vmem:[%s2497_s4 + $0x108] sm:$0xff] %v1246_v36  ;;  %v1255_v9 = vmax.f32 %v1223_v33, 0.0  ;;  %v1256_v34 = vmax.f32 %v1224_v21, 0.0  ;;  %v1257_v8 = vmax.f32 %v1225_v31, 0.0 }
 0x16d   :  { %1279 = vst [vmem:[%s2497_s4 + $0x110] sm:$0xff] %v1247_v40  ;;  %1280 = vst [vmem:[%s2497_s4 + $0x118] sm:$0xff] %v1248_v59  ;;  %v1259_v62 = vmax.f32 %v1227_v63, 0.0  ;;  %v1260_v20 = vmax.f32 %v1228_v39, 0.0  ;;  %v1261_v0 = vmax.f32 %v1229_v19, 0.0  ;;  %v1262_v28 = vmax.f32 %v1230_v27, 0.0 }
 0x16e   :  { %1282 = vst [vmem:[%s2497_s4 + $0x128] sm:$0xff] %v1250_v52  ;;  %1283 = vst [vmem:[%s2497_s4 + $0x130] sm:$0xff] %v1251_v3  ;;  %v1263_v48 = vmax.f32 %v1231_v53, 0.0  ;;  %v1264_v14 = vmax.f32 %v1232_v11, 0.0  ;;  %v1265_v6 = vmax.f32 %v1233_v46, 0.0  ;;  %v1266_v56 = vmax.f32 %v1234_v60, 0.0 }
 0x16f   :  { %1284 = vst [vmem:[%s2497_s4 + $0x138] sm:$0xff] %v1252_v26  ;;  %1285 = vst [vmem:[%s2497_s4 + $0x140] sm:$0xff] %v1253_v50  ;;  %v1267_v54 = vmax.f32 %v2358_v17, 0.0  ;;  %v1268_v24 = vmax.f32 %v2361_v57, 0.0  ;;  %v1269_v15 = vmax.f32 %v2364_v32, 0.0  ;;  %v1270_v16 = vmax.f32 %v2367_v25, 0.0 }
 0x170   :  { %1286 = vst [vmem:[%s2497_s4 + $0x148] sm:$0xff] %v1254_v18  ;;  %1287 = vst [vmem:[%s2497_s4 + $0x150] sm:$0xff] %v1255_v9  ;;  %v1271_v2 = vmax.f32 %v2370_v23, 0.0  ;;  %v1272_v61 = vmax.f32 %v2373_v43, 0.0  ;;  %v1273_v45 = vmax.f32 %v2376_v22, 0.0  ;;  %v1274_v58 = vmax.f32 %v2379_v55, 0.0 }
 0x171   :  { %1288 = vst [vmem:[%s2497_s4 + $0x158] sm:$0xff] %v1256_v34  ;;  %1289 = vst [vmem:[%s2497_s4 + $0x160] sm:$0xff] %v1257_v8  ;;  %v1275_v37 = vmax.f32 %v2382_v1, 0.0  ;;  %v1276_v12 = vmax.f32 %v2385_v38, 0.0 }
 0x172   :  { %1291 = vst [vmem:[%s2497_s4 + $0x170] sm:$0xff] %v1259_v62  ;;  %1292 = vst [vmem:[%s2497_s4 + $0x178] sm:$0xff] %v1260_v20 }
 0x173   :  { %1293 = vst [vmem:[%s2497_s4 + $0x180] sm:$0xff] %v1261_v0  ;;  %1294 = vst [vmem:[%s2497_s4 + $0x188] sm:$0xff] %v1262_v28 }
 0x174   :  { %1295 = vst [vmem:[%s2497_s4 + $0x190] sm:$0xff] %v1263_v48  ;;  %1296 = vst [vmem:[%s2497_s4 + $0x198] sm:$0xff] %v1264_v14 }
 0x175   :  { %1297 = vst [vmem:[%s2497_s4 + $0x1a0] sm:$0xff] %v1265_v6  ;;  %1298 = vst [vmem:[%s2497_s4 + $0x1a8] sm:$0xff] %v1266_v56 }
 0x176   :  { %1299 = vst [vmem:[%s2497_s4 + $0x1b0] sm:$0xff] %v1267_v54  ;;  %1300 = vst [vmem:[%s2497_s4 + $0x1b8] sm:$0xff] %v1268_v24 }
 0x177   :  { %1301 = vst [vmem:[%s2497_s4 + $0x1c0] sm:$0xff] %v1269_v15  ;;  %1302 = vst [vmem:[%s2497_s4 + $0x1c8] sm:$0xff] %v1270_v16 }
 0x178   :  { %1303 = vst [vmem:[%s2497_s4 + $0x1d0] sm:$0xff] %v1271_v2  ;;  %1304 = vst [vmem:[%s2497_s4 + $0x1d8] sm:$0xff] %v1272_v61 }
 0x179   :  { %1305 = vst [vmem:[%s2497_s4 + $0x1e0] sm:$0xff] %v1273_v45  ;;  %1306 = vst [vmem:[%s2497_s4 + $0x1e8] sm:$0xff] %v1274_v58 }
 0x17a   :  { %1307 = vst [vmem:[%s2497_s4 + $0x1f0] sm:$0xff] %v1275_v37  ;;  %1308 = vst [vmem:[%s2497_s4 + $0x1f8] sm:$0xff] %v1276_v12 }

</bundles_post_ra>
